<compile_context>
chip_gen: v7x
topology: tpu7x:2x2x1
jax: 0.10.0
libtpu: 0.0.40
codegen_flags: <defaults>
</compile_context>

<pallas_src>
import functools
import math

import jax
import jax.numpy as jnp
from jax.experimental import pallas as pl
from jax.experimental.pallas import tpu as pltpu


def _autoint_kernel(x_ref, w_ref, o_ref, *, head_num, num_layers):
    """All AutoInt layers for one batch tile, fully resident in VMEM.

    x_ref : (BT, F, E)   input batch tile
    w_ref : (L, E, 4E)   fused per-layer weights, cols = [W_Q/sqrt(d) | W_K | W_V | W_R]
    o_ref : (BT, F, E)   output batch tile
    """
    bt, f, e = x_ref.shape
    d = e // head_num

    x = x_ref[...]
    if x.dtype != jnp.float32:
        x = x.astype(jnp.float32)

    # Unrolled layer loop: x never leaves VMEM between layers.
    for layer in range(num_layers):
        w = w_ref[layer]                                     # (E, 4E), lane-dense
        if w.dtype != jnp.float32:
            w = w.astype(jnp.float32)

        # Single fused projection: (BT*F, E) @ (E, 4E) -> Q|K|V|R in one pass.
        qkvr = jnp.dot(x.reshape(bt * f, e), w,
                       preferred_element_type=jnp.float32)   # (BT*F, 4E)
        q = qkvr[:, 0 * e:1 * e].reshape(bt, f, e)            # pre-scaled by 1/sqrt(d)
        k = qkvr[:, 1 * e:2 * e].reshape(bt, f, e)
        v = qkvr[:, 2 * e:3 * e].reshape(bt, f, e)
        r = qkvr[:, 3 * e:4 * e].reshape(bt, f, e)            # residual projection

        # Per-head attention; heads are contiguous d-wide column slices
        # (matches torch.split(dim=2) + stack and the final cat along -1).
        # Batched over the batch tile via a single-batch-dim einsum.
        head_outs = []
        for h in range(head_num):
            sl = slice(h * d, (h + 1) * d)
            qh, kh, vh = q[..., sl], k[..., sl], v[..., sl]   # (BT, F, d)
            s = jnp.einsum('bqd,bkd->bqk', qh, kh,
                           preferred_element_type=jnp.float32)
            s = s - jnp.max(s, axis=-1, keepdims=True)        # stable softmax
            p = jnp.exp(s)
            p = p * pl.reciprocal(jnp.sum(p, axis=-1, keepdims=True), approx=True)
            # TODO(synk): attention dropout (p > 0) would be applied to `p` here
            # via pltpu.prng_seed / pltpu.prng_random_bits.
            head_outs.append(jnp.einsum('bqk,bkd->bqd', p, vh,
                                        preferred_element_type=jnp.float32))
        ctx = jnp.concatenate(head_outs, axis=-1)             # (BT, F, E)
        x = jnp.maximum(ctx + r, 0.0)                         # residual + ReLU

    o_ref[...] = x.astype(o_ref.dtype)


def _choose_batch_tile(batch, num_fields, target_rows=256):
    """Batch tile so BT*F fills the MXU row dim (~256), while keeping at
    least two grid steps when the batch allows (v7x has 2 TensorCores)."""
    bt = max(1, min(batch, target_rows // max(1, num_fields)))
    while bt > 1 and pl.cdiv(batch, bt) < 2:
        bt = max(1, bt // 2)
    return bt


def autoint_forward(x, params, *, head_num, batch_tile=None):
    """AutoInt forward: all layers fused into one pallas_call."""
    b, f, e = x.shape
    num_layers = len(params)
    assert e % head_num == 0, "embed_size must be divisible by head_num"
    d = e // head_num
    q_scale = 1.0 / math.sqrt(d)

    # Fuse per-layer weights wrapper-side: (L, E, 4E), cols = [W_Q/sqrt(d)|W_K|W_V|W_R].
    # Folding the score scale into W_Q removes all in-kernel score scaling.
    w = jnp.stack(
        [jnp.concatenate([wq * q_scale, wk, wv, wr], axis=1)
         for (wq, wk, wv, wr) in params],
        axis=0)

    bt = batch_tile if batch_tile is not None else _choose_batch_tile(b, f)
    padded_b = pl.cdiv(b, bt) * bt
    x_in = x if padded_b == b else jnp.pad(x, ((0, padded_b - b), (0, 0), (0, 0)))

    kernel = functools.partial(_autoint_kernel, head_num=head_num,
                               num_layers=num_layers)
    out = pl.pallas_call(
        kernel,
        out_shape=jax.ShapeDtypeStruct((padded_b, f, e), x.dtype),
        grid=(padded_b // bt,),
        in_specs=[
            pl.BlockSpec((bt, f, e), lambda i: (i, 0, 0)),
            # Same weight block every step -> stays resident in VMEM.
            pl.BlockSpec((num_layers, e, 4 * e), lambda i: (0, 0, 0)),
        ],
        out_specs=pl.BlockSpec((bt, f, e), lambda i: (i, 0, 0)),
        compiler_params=pltpu.CompilerParams(dimension_semantics=("parallel",)),
    )(x_in, w)
    return out[:b] if padded_b != b else out


def init_autoint_params(key, num_layers, embed_size):
    """Xavier-uniform init for W_Q, W_K, W_V, W_R of each layer (deterministic)."""
    bound = math.sqrt(6.0 / (embed_size + embed_size))
    params = []
    for _ in range(num_layers):
        key, k1, k2, k3, k4 = jax.random.split(key, 5)
        wq = jax.random.uniform(k1, (embed_size, embed_size), jnp.float32, -bound, bound)
        wk = jax.random.uniform(k2, (embed_size, embed_size), jnp.float32, -bound, bound)
        wv = jax.random.uniform(k3, (embed_size, embed_size), jnp.float32, -bound, bound)
        wr = jax.random.uniform(k4, (embed_size, embed_size), jnp.float32, -bound, bound)
        params.append((wq, wk, wv, wr))
    return params


def _reference_forward(x, params, head_num):
    """Pure-JAX reference matching the PyTorch forward (dropout p=0)."""
    for (wq, wk, wv, wr) in params:
        q, k, v = x @ wq, x @ wk, x @ wv
        b, f, e = x.shape
        d = e // head_num
        qh = jnp.stack(jnp.split(q, head_num, axis=2))       # (H, B, F, d)
        kh = jnp.stack(jnp.split(k, head_num, axis=2))
        vh = jnp.stack(jnp.split(v, head_num, axis=2))
        inner = jnp.matmul(qh, jnp.swapaxes(kh, -2, -1)) / math.sqrt(d)
        attn = jax.nn.softmax(inner, axis=-1)
        res = jnp.matmul(attn, vh)                            # (H, B, F, d)
        res = jnp.concatenate(jnp.split(res, head_num, axis=0), axis=-1)[0]
        res = res + x @ wr
        x = jax.nn.relu(res)
    return x


if __name__ == "__main__":
    # x : (batch_size, num_fields, embed_dim) -- same layout as the PyTorch module.
    batch, num_fields, embed_size = 2, 8, 32
    num_layers, head_num, dropout = 2, 4, 0.0

    key = jax.random.PRNGKey(0)
    key, xk = jax.random.split(key)
    x = jax.random.normal(xk, (batch, num_fields, embed_size), dtype=jnp.float32)
    params = init_autoint_params(key, num_layers, embed_size)

    out = autoint_forward(x, params, head_num=head_num)
    out = jax.block_until_ready(out)

    ref = _reference_forward(x, params, head_num)
    assert out.shape == (batch, num_fields, embed_size)
    # Tolerance accounts for the approximate (EUP) reciprocal in the softmax.
    assert jnp.allclose(out, ref, atol=5e-3, rtol=5e-3), "mismatch vs. JAX reference"

    print("KERNEL_OK")
</pallas_src>

<mosaic_0001>
module attributes {stable_mosaic.version = 11 : i64} {
  func.func @_autoint_kernel(%arg0: i32, %arg1: memref<1x8x32xf32, #tpu.memory_space<vmem>>, %arg2: memref<2x32x128xf32, #tpu.memory_space<vmem>>, %arg3: memref<1x8x32xf32, #tpu.memory_space<vmem>>) attributes {dimension_semantics = [#tpu.dimension_semantics<parallel>], iteration_bounds = array<i64: 2>, scalar_prefetch = 0 : i64, scratch_operands = 0 : i64, tpu.core_type = #tpu.core_type<tc>, window_params = [{transform_indices = @transform_0, window_bounds = array<i64: 1, 8, 32>}, {pipeline_mode = #tpu.pipeline_mode<synchronous>, transform_indices = @transform_1, window_bounds = array<i64: 2, 32, 128>}, {transform_indices = @transform_2, window_bounds = array<i64: 1, 8, 32>}]} {
    %c0 = arith.constant 0 : index
    %c0_0 = arith.constant 0 : index
    %c0_1 = arith.constant 0 : index
    %0 = vector.load %arg1[%c0, %c0_0, %c0_1] : memref<1x8x32xf32, #tpu.memory_space<vmem>>, vector<1x8x32xf32>
    %c0_2 = arith.constant 0 : index
    %c0_3 = arith.constant 0 : index
    %c0_4 = arith.constant 0 : index
    %1 = vector.load %arg2[%c0_2, %c0_3, %c0_4] : memref<2x32x128xf32, #tpu.memory_space<vmem>>, vector<1x32x128xf32>
    %2 = vector.shape_cast %1 : vector<1x32x128xf32> to vector<32x128xf32>
    %3 = vector.shape_cast %0 : vector<1x8x32xf32> to vector<8x32xf32>
    %cst = arith.constant dense<0.000000e+00> : vector<8x128xf32>
    %4 = tpu.matmul %3, %2, %cst {dimension_numbers = #tpu.dot_dimension_numbers<[1], [0], [0], [1], [0, 0, 1, 1], [], []>} : vector<8x32xf32>, vector<32x128xf32>, vector<8x128xf32> -> vector<8x128xf32>
    %5 = vector.extract_strided_slice %4 {offsets = [0, 0], sizes = [8, 32], strides = [1, 1]} : vector<8x128xf32> to vector<8x32xf32>
    %6 = vector.shape_cast %5 : vector<8x32xf32> to vector<1x8x32xf32>
    %7 = vector.extract_strided_slice %4 {offsets = [0, 32], sizes = [8, 32], strides = [1, 1]} : vector<8x128xf32> to vector<8x32xf32>
    %8 = vector.shape_cast %7 : vector<8x32xf32> to vector<1x8x32xf32>
    %9 = vector.extract_strided_slice %4 {offsets = [0, 64], sizes = [8, 32], strides = [1, 1]} : vector<8x128xf32> to vector<8x32xf32>
    %10 = vector.shape_cast %9 : vector<8x32xf32> to vector<1x8x32xf32>
    %11 = vector.extract_strided_slice %4 {offsets = [0, 96], sizes = [8, 32], strides = [1, 1]} : vector<8x128xf32> to vector<8x32xf32>
    %12 = vector.shape_cast %11 : vector<8x32xf32> to vector<1x8x32xf32>
    %13 = vector.extract_strided_slice %6 {offsets = [0, 0, 0], sizes = [1, 8, 8], strides = [1, 1, 1]} : vector<1x8x32xf32> to vector<1x8x8xf32>
    %14 = vector.extract_strided_slice %8 {offsets = [0, 0, 0], sizes = [1, 8, 8], strides = [1, 1, 1]} : vector<1x8x32xf32> to vector<1x8x8xf32>
    %15 = vector.extract_strided_slice %10 {offsets = [0, 0, 0], sizes = [1, 8, 8], strides = [1, 1, 1]} : vector<1x8x32xf32> to vector<1x8x8xf32>
    "tpu.trace_start"() <{level = 10 : i32, message = "bqd,bkd->bqk"}> : () -> ()
    %cst_5 = arith.constant dense<0.000000e+00> : vector<1x8x8xf32>
    %16 = tpu.matmul %13, %14, %cst_5 {dimension_numbers = #tpu.dot_dimension_numbers<[2], [2], [1], [1], [0, 0, 0, 1, 1, 1], [0], [0]>} : vector<1x8x8xf32>, vector<1x8x8xf32>, vector<1x8x8xf32> -> vector<1x8x8xf32>
    "tpu.trace_stop"() : () -> ()
    %cst_6 = arith.constant dense<0xFF800000> : vector<1x8xf32>
    %17 = vector.multi_reduction <maximumf>, %16, %cst_6 [2] : vector<1x8x8xf32> to vector<1x8xf32>
    %18 = vector.shape_cast %17 : vector<1x8xf32> to vector<1x8x1xf32>
    %19 = vector.broadcast %18 : vector<1x8x1xf32> to vector<1x8x8xf32>
    %20 = arith.subf %16, %19 : vector<1x8x8xf32>
    %21 = math.exp %20 : vector<1x8x8xf32>
    %cst_7 = arith.constant dense<0.000000e+00> : vector<1x8xf32>
    %22 = vector.multi_reduction <add>, %21, %cst_7 [2] : vector<1x8x8xf32> to vector<1x8xf32>
    %23 = vector.shape_cast %22 : vector<1x8xf32> to vector<1x8x1xf32>
    %24 = tpu.reciprocal %23 {approx = true} : vector<1x8x1xf32> -> vector<1x8x1xf32>
    %25 = vector.broadcast %24 : vector<1x8x1xf32> to vector<1x8x8xf32>
    %26 = arith.mulf %21, %25 : vector<1x8x8xf32>
    "tpu.trace_start"() <{level = 10 : i32, message = "bqk,bkd->bqd"}> : () -> ()
    %cst_8 = arith.constant dense<0.000000e+00> : vector<1x8x8xf32>
    %27 = tpu.matmul %26, %15, %cst_8 {dimension_numbers = #tpu.dot_dimension_numbers<[2], [1], [1], [2], [0, 0, 0, 1, 1, 2], [0], [0]>} : vector<1x8x8xf32>, vector<1x8x8xf32>, vector<1x8x8xf32> -> vector<1x8x8xf32>
    "tpu.trace_stop"() : () -> ()
    %28 = vector.extract_strided_slice %6 {offsets = [0, 0, 8], sizes = [1, 8, 8], strides = [1, 1, 1]} : vector<1x8x32xf32> to vector<1x8x8xf32>
    %29 = vector.extract_strided_slice %8 {offsets = [0, 0, 8], sizes = [1, 8, 8], strides = [1, 1, 1]} : vector<1x8x32xf32> to vector<1x8x8xf32>
    %30 = vector.extract_strided_slice %10 {offsets = [0, 0, 8], sizes = [1, 8, 8], strides = [1, 1, 1]} : vector<1x8x32xf32> to vector<1x8x8xf32>
    "tpu.trace_start"() <{level = 10 : i32, message = "bqd,bkd->bqk"}> : () -> ()
    %cst_9 = arith.constant dense<0.000000e+00> : vector<1x8x8xf32>
    %31 = tpu.matmul %28, %29, %cst_9 {dimension_numbers = #tpu.dot_dimension_numbers<[2], [2], [1], [1], [0, 0, 0, 1, 1, 1], [0], [0]>} : vector<1x8x8xf32>, vector<1x8x8xf32>, vector<1x8x8xf32> -> vector<1x8x8xf32>
    "tpu.trace_stop"() : () -> ()
    %cst_10 = arith.constant dense<0xFF800000> : vector<1x8xf32>
    %32 = vector.multi_reduction <maximumf>, %31, %cst_10 [2] : vector<1x8x8xf32> to vector<1x8xf32>
    %33 = vector.shape_cast %32 : vector<1x8xf32> to vector<1x8x1xf32>
    %34 = vector.broadcast %33 : vector<1x8x1xf32> to vector<1x8x8xf32>
    %35 = arith.subf %31, %34 : vector<1x8x8xf32>
    %36 = math.exp %35 : vector<1x8x8xf32>
    %cst_11 = arith.constant dense<0.000000e+00> : vector<1x8xf32>
    %37 = vector.multi_reduction <add>, %36, %cst_11 [2] : vector<1x8x8xf32> to vector<1x8xf32>
    %38 = vector.shape_cast %37 : vector<1x8xf32> to vector<1x8x1xf32>
    %39 = tpu.reciprocal %38 {approx = true} : vector<1x8x1xf32> -> vector<1x8x1xf32>
    %40 = vector.broadcast %39 : vector<1x8x1xf32> to vector<1x8x8xf32>
    %41 = arith.mulf %36, %40 : vector<1x8x8xf32>
    "tpu.trace_start"() <{level = 10 : i32, message = "bqk,bkd->bqd"}> : () -> ()
    %cst_12 = arith.constant dense<0.000000e+00> : vector<1x8x8xf32>
    %42 = tpu.matmul %41, %30, %cst_12 {dimension_numbers = #tpu.dot_dimension_numbers<[2], [1], [1], [2], [0, 0, 0, 1, 1, 2], [0], [0]>} : vector<1x8x8xf32>, vector<1x8x8xf32>, vector<1x8x8xf32> -> vector<1x8x8xf32>
    "tpu.trace_stop"() : () -> ()
    %43 = vector.extract_strided_slice %6 {offsets = [0, 0, 16], sizes = [1, 8, 8], strides = [1, 1, 1]} : vector<1x8x32xf32> to vector<1x8x8xf32>
    %44 = vector.extract_strided_slice %8 {offsets = [0, 0, 16], sizes = [1, 8, 8], strides = [1, 1, 1]} : vector<1x8x32xf32> to vector<1x8x8xf32>
    %45 = vector.extract_strided_slice %10 {offsets = [0, 0, 16], sizes = [1, 8, 8], strides = [1, 1, 1]} : vector<1x8x32xf32> to vector<1x8x8xf32>
    "tpu.trace_start"() <{level = 10 : i32, message = "bqd,bkd->bqk"}> : () -> ()
    %cst_13 = arith.constant dense<0.000000e+00> : vector<1x8x8xf32>
    %46 = tpu.matmul %43, %44, %cst_13 {dimension_numbers = #tpu.dot_dimension_numbers<[2], [2], [1], [1], [0, 0, 0, 1, 1, 1], [0], [0]>} : vector<1x8x8xf32>, vector<1x8x8xf32>, vector<1x8x8xf32> -> vector<1x8x8xf32>
    "tpu.trace_stop"() : () -> ()
    %cst_14 = arith.constant dense<0xFF800000> : vector<1x8xf32>
    %47 = vector.multi_reduction <maximumf>, %46, %cst_14 [2] : vector<1x8x8xf32> to vector<1x8xf32>
    %48 = vector.shape_cast %47 : vector<1x8xf32> to vector<1x8x1xf32>
    %49 = vector.broadcast %48 : vector<1x8x1xf32> to vector<1x8x8xf32>
    %50 = arith.subf %46, %49 : vector<1x8x8xf32>
    %51 = math.exp %50 : vector<1x8x8xf32>
    %cst_15 = arith.constant dense<0.000000e+00> : vector<1x8xf32>
    %52 = vector.multi_reduction <add>, %51, %cst_15 [2] : vector<1x8x8xf32> to vector<1x8xf32>
    %53 = vector.shape_cast %52 : vector<1x8xf32> to vector<1x8x1xf32>
    %54 = tpu.reciprocal %53 {approx = true} : vector<1x8x1xf32> -> vector<1x8x1xf32>
    %55 = vector.broadcast %54 : vector<1x8x1xf32> to vector<1x8x8xf32>
    %56 = arith.mulf %51, %55 : vector<1x8x8xf32>
    "tpu.trace_start"() <{level = 10 : i32, message = "bqk,bkd->bqd"}> : () -> ()
    %cst_16 = arith.constant dense<0.000000e+00> : vector<1x8x8xf32>
    %57 = tpu.matmul %56, %45, %cst_16 {dimension_numbers = #tpu.dot_dimension_numbers<[2], [1], [1], [2], [0, 0, 0, 1, 1, 2], [0], [0]>} : vector<1x8x8xf32>, vector<1x8x8xf32>, vector<1x8x8xf32> -> vector<1x8x8xf32>
    "tpu.trace_stop"() : () -> ()
    %58 = vector.extract_strided_slice %6 {offsets = [0, 0, 24], sizes = [1, 8, 8], strides = [1, 1, 1]} : vector<1x8x32xf32> to vector<1x8x8xf32>
    %59 = vector.extract_strided_slice %8 {offsets = [0, 0, 24], sizes = [1, 8, 8], strides = [1, 1, 1]} : vector<1x8x32xf32> to vector<1x8x8xf32>
    %60 = vector.extract_strided_slice %10 {offsets = [0, 0, 24], sizes = [1, 8, 8], strides = [1, 1, 1]} : vector<1x8x32xf32> to vector<1x8x8xf32>
    "tpu.trace_start"() <{level = 10 : i32, message = "bqd,bkd->bqk"}> : () -> ()
    %cst_17 = arith.constant dense<0.000000e+00> : vector<1x8x8xf32>
    %61 = tpu.matmul %58, %59, %cst_17 {dimension_numbers = #tpu.dot_dimension_numbers<[2], [2], [1], [1], [0, 0, 0, 1, 1, 1], [0], [0]>} : vector<1x8x8xf32>, vector<1x8x8xf32>, vector<1x8x8xf32> -> vector<1x8x8xf32>
    "tpu.trace_stop"() : () -> ()
    %cst_18 = arith.constant dense<0xFF800000> : vector<1x8xf32>
    %62 = vector.multi_reduction <maximumf>, %61, %cst_18 [2] : vector<1x8x8xf32> to vector<1x8xf32>
    %63 = vector.shape_cast %62 : vector<1x8xf32> to vector<1x8x1xf32>
    %64 = vector.broadcast %63 : vector<1x8x1xf32> to vector<1x8x8xf32>
    %65 = arith.subf %61, %64 : vector<1x8x8xf32>
    %66 = math.exp %65 : vector<1x8x8xf32>
    %cst_19 = arith.constant dense<0.000000e+00> : vector<1x8xf32>
    %67 = vector.multi_reduction <add>, %66, %cst_19 [2] : vector<1x8x8xf32> to vector<1x8xf32>
    %68 = vector.shape_cast %67 : vector<1x8xf32> to vector<1x8x1xf32>
    %69 = tpu.reciprocal %68 {approx = true} : vector<1x8x1xf32> -> vector<1x8x1xf32>
    %70 = vector.broadcast %69 : vector<1x8x1xf32> to vector<1x8x8xf32>
    %71 = arith.mulf %66, %70 : vector<1x8x8xf32>
    "tpu.trace_start"() <{level = 10 : i32, message = "bqk,bkd->bqd"}> : () -> ()
    %cst_20 = arith.constant dense<0.000000e+00> : vector<1x8x8xf32>
    %72 = tpu.matmul %71, %60, %cst_20 {dimension_numbers = #tpu.dot_dimension_numbers<[2], [1], [1], [2], [0, 0, 0, 1, 1, 2], [0], [0]>} : vector<1x8x8xf32>, vector<1x8x8xf32>, vector<1x8x8xf32> -> vector<1x8x8xf32>
    "tpu.trace_stop"() : () -> ()
    %73 = tpu.concatenate %27, %42, %57, %72 in 2 : vector<1x8x8xf32>, vector<1x8x8xf32>, vector<1x8x8xf32>, vector<1x8x8xf32> -> vector<1x8x32xf32>
    %74 = arith.addf %73, %12 : vector<1x8x32xf32>
    %cst_21 = arith.constant 0.000000e+00 : f32
    %75 = vector.broadcast %cst_21 : f32 to vector<1x8x32xf32>
    %76 = arith.maximumf %74, %75 : vector<1x8x32xf32>
    %c1 = arith.constant 1 : index
    %c0_22 = arith.constant 0 : index
    %c0_23 = arith.constant 0 : index
    %77 = vector.load %arg2[%c1, %c0_22, %c0_23] : memref<2x32x128xf32, #tpu.memory_space<vmem>>, vector<1x32x128xf32>
    %78 = vector.shape_cast %77 : vector<1x32x128xf32> to vector<32x128xf32>
    %79 = vector.shape_cast %76 : vector<1x8x32xf32> to vector<8x32xf32>
    %cst_24 = arith.constant dense<0.000000e+00> : vector<8x128xf32>
    %80 = tpu.matmul %79, %78, %cst_24 {dimension_numbers = #tpu.dot_dimension_numbers<[1], [0], [0], [1], [0, 0, 1, 1], [], []>} : vector<8x32xf32>, vector<32x128xf32>, vector<8x128xf32> -> vector<8x128xf32>
    %81 = vector.extract_strided_slice %80 {offsets = [0, 0], sizes = [8, 32], strides = [1, 1]} : vector<8x128xf32> to vector<8x32xf32>
    %82 = vector.shape_cast %81 : vector<8x32xf32> to vector<1x8x32xf32>
    %83 = vector.extract_strided_slice %80 {offsets = [0, 32], sizes = [8, 32], strides = [1, 1]} : vector<8x128xf32> to vector<8x32xf32>
    %84 = vector.shape_cast %83 : vector<8x32xf32> to vector<1x8x32xf32>
    %85 = vector.extract_strided_slice %80 {offsets = [0, 64], sizes = [8, 32], strides = [1, 1]} : vector<8x128xf32> to vector<8x32xf32>
    %86 = vector.shape_cast %85 : vector<8x32xf32> to vector<1x8x32xf32>
    %87 = vector.extract_strided_slice %80 {offsets = [0, 96], sizes = [8, 32], strides = [1, 1]} : vector<8x128xf32> to vector<8x32xf32>
    %88 = vector.shape_cast %87 : vector<8x32xf32> to vector<1x8x32xf32>
    %89 = vector.extract_strided_slice %82 {offsets = [0, 0, 0], sizes = [1, 8, 8], strides = [1, 1, 1]} : vector<1x8x32xf32> to vector<1x8x8xf32>
    %90 = vector.extract_strided_slice %84 {offsets = [0, 0, 0], sizes = [1, 8, 8], strides = [1, 1, 1]} : vector<1x8x32xf32> to vector<1x8x8xf32>
    %91 = vector.extract_strided_slice %86 {offsets = [0, 0, 0], sizes = [1, 8, 8], strides = [1, 1, 1]} : vector<1x8x32xf32> to vector<1x8x8xf32>
    "tpu.trace_start"() <{level = 10 : i32, message = "bqd,bkd->bqk"}> : () -> ()
    %cst_25 = arith.constant dense<0.000000e+00> : vector<1x8x8xf32>
    %92 = tpu.matmul %89, %90, %cst_25 {dimension_numbers = #tpu.dot_dimension_numbers<[2], [2], [1], [1], [0, 0, 0, 1, 1, 1], [0], [0]>} : vector<1x8x8xf32>, vector<1x8x8xf32>, vector<1x8x8xf32> -> vector<1x8x8xf32>
    "tpu.trace_stop"() : () -> ()
    %cst_26 = arith.constant dense<0xFF800000> : vector<1x8xf32>
    %93 = vector.multi_reduction <maximumf>, %92, %cst_26 [2] : vector<1x8x8xf32> to vector<1x8xf32>
    %94 = vector.shape_cast %93 : vector<1x8xf32> to vector<1x8x1xf32>
    %95 = vector.broadcast %94 : vector<1x8x1xf32> to vector<1x8x8xf32>
    %96 = arith.subf %92, %95 : vector<1x8x8xf32>
    %97 = math.exp %96 : vector<1x8x8xf32>
    %cst_27 = arith.constant dense<0.000000e+00> : vector<1x8xf32>
    %98 = vector.multi_reduction <add>, %97, %cst_27 [2] : vector<1x8x8xf32> to vector<1x8xf32>
    %99 = vector.shape_cast %98 : vector<1x8xf32> to vector<1x8x1xf32>
    %100 = tpu.reciprocal %99 {approx = true} : vector<1x8x1xf32> -> vector<1x8x1xf32>
    %101 = vector.broadcast %100 : vector<1x8x1xf32> to vector<1x8x8xf32>
    %102 = arith.mulf %97, %101 : vector<1x8x8xf32>
    "tpu.trace_start"() <{level = 10 : i32, message = "bqk,bkd->bqd"}> : () -> ()
    %cst_28 = arith.constant dense<0.000000e+00> : vector<1x8x8xf32>
    %103 = tpu.matmul %102, %91, %cst_28 {dimension_numbers = #tpu.dot_dimension_numbers<[2], [1], [1], [2], [0, 0, 0, 1, 1, 2], [0], [0]>} : vector<1x8x8xf32>, vector<1x8x8xf32>, vector<1x8x8xf32> -> vector<1x8x8xf32>
    "tpu.trace_stop"() : () -> ()
    %104 = vector.extract_strided_slice %82 {offsets = [0, 0, 8], sizes = [1, 8, 8], strides = [1, 1, 1]} : vector<1x8x32xf32> to vector<1x8x8xf32>
    %105 = vector.extract_strided_slice %84 {offsets = [0, 0, 8], sizes = [1, 8, 8], strides = [1, 1, 1]} : vector<1x8x32xf32> to vector<1x8x8xf32>
    %106 = vector.extract_strided_slice %86 {offsets = [0, 0, 8], sizes = [1, 8, 8], strides = [1, 1, 1]} : vector<1x8x32xf32> to vector<1x8x8xf32>
    "tpu.trace_start"() <{level = 10 : i32, message = "bqd,bkd->bqk"}> : () -> ()
    %cst_29 = arith.constant dense<0.000000e+00> : vector<1x8x8xf32>
    %107 = tpu.matmul %104, %105, %cst_29 {dimension_numbers = #tpu.dot_dimension_numbers<[2], [2], [1], [1], [0, 0, 0, 1, 1, 1], [0], [0]>} : vector<1x8x8xf32>, vector<1x8x8xf32>, vector<1x8x8xf32> -> vector<1x8x8xf32>
    "tpu.trace_stop"() : () -> ()
    %cst_30 = arith.constant dense<0xFF800000> : vector<1x8xf32>
    %108 = vector.multi_reduction <maximumf>, %107, %cst_30 [2] : vector<1x8x8xf32> to vector<1x8xf32>
    %109 = vector.shape_cast %108 : vector<1x8xf32> to vector<1x8x1xf32>
    %110 = vector.broadcast %109 : vector<1x8x1xf32> to vector<1x8x8xf32>
    %111 = arith.subf %107, %110 : vector<1x8x8xf32>
    %112 = math.exp %111 : vector<1x8x8xf32>
    %cst_31 = arith.constant dense<0.000000e+00> : vector<1x8xf32>
    %113 = vector.multi_reduction <add>, %112, %cst_31 [2] : vector<1x8x8xf32> to vector<1x8xf32>
    %114 = vector.shape_cast %113 : vector<1x8xf32> to vector<1x8x1xf32>
    %115 = tpu.reciprocal %114 {approx = true} : vector<1x8x1xf32> -> vector<1x8x1xf32>
    %116 = vector.broadcast %115 : vector<1x8x1xf32> to vector<1x8x8xf32>
    %117 = arith.mulf %112, %116 : vector<1x8x8xf32>
    "tpu.trace_start"() <{level = 10 : i32, message = "bqk,bkd->bqd"}> : () -> ()
    %cst_32 = arith.constant dense<0.000000e+00> : vector<1x8x8xf32>
    %118 = tpu.matmul %117, %106, %cst_32 {dimension_numbers = #tpu.dot_dimension_numbers<[2], [1], [1], [2], [0, 0, 0, 1, 1, 2], [0], [0]>} : vector<1x8x8xf32>, vector<1x8x8xf32>, vector<1x8x8xf32> -> vector<1x8x8xf32>
    "tpu.trace_stop"() : () -> ()
    %119 = vector.extract_strided_slice %82 {offsets = [0, 0, 16], sizes = [1, 8, 8], strides = [1, 1, 1]} : vector<1x8x32xf32> to vector<1x8x8xf32>
    %120 = vector.extract_strided_slice %84 {offsets = [0, 0, 16], sizes = [1, 8, 8], strides = [1, 1, 1]} : vector<1x8x32xf32> to vector<1x8x8xf32>
    %121 = vector.extract_strided_slice %86 {offsets = [0, 0, 16], sizes = [1, 8, 8], strides = [1, 1, 1]} : vector<1x8x32xf32> to vector<1x8x8xf32>
    "tpu.trace_start"() <{level = 10 : i32, message = "bqd,bkd->bqk"}> : () -> ()
    %cst_33 = arith.constant dense<0.000000e+00> : vector<1x8x8xf32>
    %122 = tpu.matmul %119, %120, %cst_33 {dimension_numbers = #tpu.dot_dimension_numbers<[2], [2], [1], [1], [0, 0, 0, 1, 1, 1], [0], [0]>} : vector<1x8x8xf32>, vector<1x8x8xf32>, vector<1x8x8xf32> -> vector<1x8x8xf32>
    "tpu.trace_stop"() : () -> ()
    %cst_34 = arith.constant dense<0xFF800000> : vector<1x8xf32>
    %123 = vector.multi_reduction <maximumf>, %122, %cst_34 [2] : vector<1x8x8xf32> to vector<1x8xf32>
    %124 = vector.shape_cast %123 : vector<1x8xf32> to vector<1x8x1xf32>
    %125 = vector.broadcast %124 : vector<1x8x1xf32> to vector<1x8x8xf32>
    %126 = arith.subf %122, %125 : vector<1x8x8xf32>
    %127 = math.exp %126 : vector<1x8x8xf32>
    %cst_35 = arith.constant dense<0.000000e+00> : vector<1x8xf32>
    %128 = vector.multi_reduction <add>, %127, %cst_35 [2] : vector<1x8x8xf32> to vector<1x8xf32>
    %129 = vector.shape_cast %128 : vector<1x8xf32> to vector<1x8x1xf32>
    %130 = tpu.reciprocal %129 {approx = true} : vector<1x8x1xf32> -> vector<1x8x1xf32>
    %131 = vector.broadcast %130 : vector<1x8x1xf32> to vector<1x8x8xf32>
    %132 = arith.mulf %127, %131 : vector<1x8x8xf32>
    "tpu.trace_start"() <{level = 10 : i32, message = "bqk,bkd->bqd"}> : () -> ()
    %cst_36 = arith.constant dense<0.000000e+00> : vector<1x8x8xf32>
    %133 = tpu.matmul %132, %121, %cst_36 {dimension_numbers = #tpu.dot_dimension_numbers<[2], [1], [1], [2], [0, 0, 0, 1, 1, 2], [0], [0]>} : vector<1x8x8xf32>, vector<1x8x8xf32>, vector<1x8x8xf32> -> vector<1x8x8xf32>
    "tpu.trace_stop"() : () -> ()
    %134 = vector.extract_strided_slice %82 {offsets = [0, 0, 24], sizes = [1, 8, 8], strides = [1, 1, 1]} : vector<1x8x32xf32> to vector<1x8x8xf32>
    %135 = vector.extract_strided_slice %84 {offsets = [0, 0, 24], sizes = [1, 8, 8], strides = [1, 1, 1]} : vector<1x8x32xf32> to vector<1x8x8xf32>
    %136 = vector.extract_strided_slice %86 {offsets = [0, 0, 24], sizes = [1, 8, 8], strides = [1, 1, 1]} : vector<1x8x32xf32> to vector<1x8x8xf32>
    "tpu.trace_start"() <{level = 10 : i32, message = "bqd,bkd->bqk"}> : () -> ()
    %cst_37 = arith.constant dense<0.000000e+00> : vector<1x8x8xf32>
    %137 = tpu.matmul %134, %135, %cst_37 {dimension_numbers = #tpu.dot_dimension_numbers<[2], [2], [1], [1], [0, 0, 0, 1, 1, 1], [0], [0]>} : vector<1x8x8xf32>, vector<1x8x8xf32>, vector<1x8x8xf32> -> vector<1x8x8xf32>
    "tpu.trace_stop"() : () -> ()
    %cst_38 = arith.constant dense<0xFF800000> : vector<1x8xf32>
    %138 = vector.multi_reduction <maximumf>, %137, %cst_38 [2] : vector<1x8x8xf32> to vector<1x8xf32>
    %139 = vector.shape_cast %138 : vector<1x8xf32> to vector<1x8x1xf32>
    %140 = vector.broadcast %139 : vector<1x8x1xf32> to vector<1x8x8xf32>
    %141 = arith.subf %137, %140 : vector<1x8x8xf32>
    %142 = math.exp %141 : vector<1x8x8xf32>
    %cst_39 = arith.constant dense<0.000000e+00> : vector<1x8xf32>
    %143 = vector.multi_reduction <add>, %142, %cst_39 [2] : vector<1x8x8xf32> to vector<1x8xf32>
    %144 = vector.shape_cast %143 : vector<1x8xf32> to vector<1x8x1xf32>
    %145 = tpu.reciprocal %144 {approx = true} : vector<1x8x1xf32> -> vector<1x8x1xf32>
    %146 = vector.broadcast %145 : vector<1x8x1xf32> to vector<1x8x8xf32>
    %147 = arith.mulf %142, %146 : vector<1x8x8xf32>
    "tpu.trace_start"() <{level = 10 : i32, message = "bqk,bkd->bqd"}> : () -> ()
    %cst_40 = arith.constant dense<0.000000e+00> : vector<1x8x8xf32>
    %148 = tpu.matmul %147, %136, %cst_40 {dimension_numbers = #tpu.dot_dimension_numbers<[2], [1], [1], [2], [0, 0, 0, 1, 1, 2], [0], [0]>} : vector<1x8x8xf32>, vector<1x8x8xf32>, vector<1x8x8xf32> -> vector<1x8x8xf32>
    "tpu.trace_stop"() : () -> ()
    %149 = tpu.concatenate %103, %118, %133, %148 in 2 : vector<1x8x8xf32>, vector<1x8x8xf32>, vector<1x8x8xf32>, vector<1x8x8xf32> -> vector<1x8x32xf32>
    %150 = arith.addf %149, %88 : vector<1x8x32xf32>
    %cst_41 = arith.constant 0.000000e+00 : f32
    %151 = vector.broadcast %cst_41 : f32 to vector<1x8x32xf32>
    %152 = arith.maximumf %150, %151 : vector<1x8x32xf32>
    %c0_42 = arith.constant 0 : index
    %c0_43 = arith.constant 0 : index
    %c0_44 = arith.constant 0 : index
    %153 = vector.load %arg3[%c0_42, %c0_43, %c0_44] : memref<1x8x32xf32, #tpu.memory_space<vmem>>, vector<1x8x32xf32>
    tpu.vector_store %arg3[%c0_42, %c0_43, %c0_44], %152 {strides = array<i32>} : memref<1x8x32xf32, #tpu.memory_space<vmem>>, vector<1x8x32xf32>,
    return
  }
  func.func @transform_0(%arg0: i32) -> (i32, i32, i32) {
    %c0_i32 = arith.constant 0 : i32
    %c0_i32_0 = arith.constant 0 : i32
    %c0_i32_1 = arith.constant 0 : i32
    return %arg0, %c0_i32, %c0_i32_0 : i32, i32, i32
  }
  func.func @transform_1(%arg0: i32) -> (i32, i32, i32) {
    %c0_i32 = arith.constant 0 : i32
    %c0_i32_0 = arith.constant 0 : i32
    %c0_i32_1 = arith.constant 0 : i32
    %c0_i32_2 = arith.constant 0 : i32
    return %c0_i32, %c0_i32_0, %c0_i32_1 : i32, i32, i32
  }
  func.func @transform_2(%arg0: i32) -> (i32, i32, i32) {
    %c0_i32 = arith.constant 0 : i32
    %c0_i32_0 = arith.constant 0 : i32
    %c0_i32_1 = arith.constant 0 : i32
    return %arg0, %c0_i32, %c0_i32_0 : i32, i32, i32
  }
}

</mosaic_0001>

<bundles_post_ra>
// kernel: tpu_custom_call.1
= control target key start
LH: loop header
LB: loop body
LE: loop exit
PB: predicated region body
PF: predicated region fallthrough
CT: control target
= control target key end

     0   :  { %7 = vsyncpa [#allocation3], 0  ;;  %s2625_s0 = inlined_call_operand.hbm [shape: f32[2,8,32], index: 0, kind: input, shape index: {}]   ;;  %s2626_s1 = inlined_call_operand.hbm [shape: f32[2,32,128], index: 1, kind: input, shape index: {}]   ;;  %s2627_s2 = inlined_call_operand.hbm [shape: f32[2,8,32], index: 2, kind: output, shape index: {}]  }
   0x1   :  { %9 = vsyncpa [#allocation3 + $0x1], 0 }
   0x2   :  { %10 = vsyncpa [#allocation6], 0 }
   0x3   :  { %11 = vsyncpa [#allocation4], 0 }
   0x4   :  { %13 = vsyncpa [#allocation4 + $0x1], 0  ;;  %s2260_s9 = smov 0   ;;  %s2262_s10 = smov 0  }
   0x5   :  { %s2264_s11 = smov 0   ;;  %s2266_s12 = smov 0  }
   0x6 LB: > { %s2281_s13 = sadd.s32 4294967295, %s2220_s12   ;;  %s1787_s14 = sadd.s32 4294967294, %s2220_s12   ;;  %s2220_s12 = sphi %s2266_s12, %s2647_s12   ;;  %s2216_s11 = sphi %s2264_s11, %s2646_s11   ;;  %s2212_s10 = sphi %s2262_s10, %s2645_s10   ;;  %s2208_s9 = sphi %s2260_s9, %s2644_s9  }
   0x7   : > { %p39_p0 = scmp.ne.s32.totalorder %s2212_s10, %s2208_s9  ;;  %p2628_p1 = scmp.eq.s32.totalorder %s2281_s13, 0 }
   0x8   : > { %p90_p3 = scmp.eq.s32.totalorder %s1787_s14, 1  ;;  %p1788_p5 = scmp.ge.s32.totalorder %s2220_s12, 1 }
   0x9   : > { %p2290_p4 = por %p2628_p1, %p39_p0  ;;  %p97_p7 = scmp.lt.s32.totalorder %s2220_s12, 3 }
   0xa   : > { %p2295_p6 = por %p90_p3, %p39_p0  ;;  %s2222_s18 = smov [#allocation5]  }
   0xb   : > { %s2631_s15 = scalar_select %p2290_p4, 1, 0 }
   0xc   : > { %s2632_s16 = scalar_select %p2295_p6, 1, 0 }
   0xd   : > { %p2300_p8 = pnand %p1788_p5, %p97_p7  ;;  %s109_s19 = sshll.u32 %s2222_s18, 4  ;;  %s2304_s19 = int_to_ptr.vmem [resolvable:$true] %s109_s19 }
   0xe   : > { %s2316_s21 = sadd.s32 1, %s2220_s12   ;;  %s26_s22 = sadd.s32 1, %s2216_s11 }
   0xf   : > { %s2633_s17 = scalar_select %p2300_p8, 1, 0 }
  0x10   : > { %p1991_p9 = pneg %p2300_p8  ;;  %s23_s23 = ssub.s32 %s2220_s12, %s2316_s21 }
  0x11   : > { %s2092_s26 = scalar_lea.hbm %s2626_s1, 1024 }
  0x12   : > { %p2311_p11 = pnand %p1991_p9, %p2628_p1  ;;  %p2093_p12 = scmp.ne.s32.totalorder %s2626_s1, %s2092_s26 }
  0x13   : > { %p2099_p5 = scmp.lt.u32.totalorder %s2092_s26, %s2626_s1 }
  0x14   : > { %p2094_p13 = pneg %p2311_p11 }
  0x16   : > { %p2095_p0 = pnand %p2094_p13, %p2093_p12 }
  0x18   : > { %p2096_p3 = pneg %p2095_p0 }
  0x1a   : > { %p2101_p7 = pnand %p2099_p5, %p2096_p3 }
  0x1c   : > { %2104 = shalt.err (!%p2101_p7)
}
  0x1d   : > { %s2105_s3 = scalar_lea.vmem %s2304_s19, 1024  ;;  %p2113_p2 = scmp.lt.s32.totalorder %s2304_s19, %s2304_s19 }
  0x1e   : > { %p2106_p9 = scmp.ne.s32.totalorder %s2304_s19, %s2105_s3  ;;  %p2114_p6 = scmp.lt.s32.totalorder %s2105_s3, %s2105_s3 }
  0x20   : > { %p2108_p10 = pnand %p2106_p9, %p2094_p13  ;;  %p2115_p4 = por %p2114_p6, %p2113_p2 }
  0x22   : > { %p2109_p1 = pneg %p2108_p10 }
  0x24   : > { %p2116_p8 = pnand %p2115_p4, %p2109_p1 }
  0x26   : > { %2119 = shalt.err (!%p2116_p8)
}
  0x27   : > { %s2223_s4 = smov 128   ;;  %s2224_s5 = smov 8  }
  0x28   : > { %1994 = dma.hbm_to_vmem [thread:$0]  (!%p2311_p11), %s2626_s1, 1024, %s2304_s19, [#allocation6], %s2223_s4, %s2223_s4, %s2224_s5  }
  0x29   : > { %p24_p2 = scmp.eq.s32.totalorder %s23_s23, 0  ;;  %p33_p1 = scmp.ne.s32.totalorder %s2216_s11, %s2212_s10 }
  0x2a   : > { %p34_p4 = scmp.eq.s32.totalorder %s2220_s12, 0  ;;  %p2004_p6 = scmp.lt.s32.totalorder %s2220_s12, 2 }
  0x2b   : > { %s2347_s8 = scalar_select %p24_p2, %s2216_s11, %s26_s22  }
  0x2c   : > { %p35_p8 = por %p34_p4, %p33_p1  ;;  %p2635_p10 = scmp.eq.s32.totalorder %s2281_s13, 1 }
  0x2d   : > { %s123_s18 = sand.u32 1, %s2216_s11   ;;  %s1792_s24 = sshll.u32 %s2220_s12, 7 }
  0x2e   : > { %p2351_p12 = por %p2635_p10, %p33_p1  ;;  %s1791_s25 = sshll.u32 %s123_s18, 3 }
  0x2f   : > { %s2360_s27 = scalar_lea.hbm %s2625_s0, %s1792_s24  ;;  %s127_s19 = scalar_lea.vmem [#allocation2], %s1791_s25 }
  0x30   : > { %s134_s22 = sshll.u32 %s127_s19, 4  ;;  %p2362_p11 = pnand %p2004_p6, %p35_p8  ;;  %s2366_s22 = int_to_ptr.vmem [resolvable:$true] %s134_s22 }
  0x31   : > { %s124_s28 = scalar_lea.sflag [#allocation3], %s123_s18  ;;  %s2120_s29 = scalar_lea.hbm %s2360_s27, 128 }
  0x32   : > { %p2121_p13 = scmp.ne.s32.totalorder %s2360_s27, %s2120_s29  ;;  %p2122_p0 = pneg %p2362_p11 }
  0x33   : > { %s2125_s4 = scalar_lea.hbm %s2625_s0, 256  ;;  %p2126_p7 = scmp.lt.u32.totalorder %s2360_s27, %s2625_s0 }
  0x34   : > { %p2123_p3 = pnand %p2122_p0, %p2121_p13  ;;  %p2127_p9 = scmp.lt.u32.totalorder %s2125_s4, %s2120_s29 }
  0x35   : > { %p2129_p1 = scmp.lt.u32.totalorder %s2120_s29, %s2360_s27 }
  0x36   : > { %p2124_p5 = pneg %p2123_p3  ;;  %p2128_p2 = por %p2127_p9, %p2126_p7 }
  0x38   : > { %p2130_p4 = por %p2129_p1, %p2128_p2 }
  0x3a   : > { %p2131_p6 = pnand %p2130_p4, %p2124_p5 }
  0x3c   : > { %2134 = shalt.err (!%p2131_p6)
}
  0x3d   : > { %s2135_s7 = scalar_lea.vmem %s2366_s22, 128  ;;  %s2225_s18 = smov [#allocation2]  }
  0x3e   : > { %p2136_p8 = scmp.ne.s32.totalorder %s2366_s22, %s2135_s7  ;;  %s2140_s24 = sshll.u32 %s2225_s18, 4  ;;  %s2141_s24 = int_to_ptr.vmem [resolvable:$false] %s2140_s24 }
  0x3f   : > { %s2142_s25 = scalar_lea.vmem %s2141_s24, 256  ;;  %p2143_p3 = scmp.lt.s32.totalorder %s2366_s22, %s2141_s24 }
  0x40   : > { %p2138_p10 = pnand %p2136_p8, %p2122_p0  ;;  %p2144_p7 = scmp.lt.s32.totalorder %s2142_s25, %s2135_s7 }
  0x42   : > { %p2139_p13 = pneg %p2138_p10  ;;  %p2145_p9 = por %p2144_p7, %p2143_p3 }
  0x44   : > { %p2146_p2 = pnand %p2145_p9, %p2139_p13 }
  0x46   : > { %2149 = shalt.err (!%p2146_p2)
}
  0x47   : > { %1998 = dma.hbm_to_vmem [thread:$0]  (!%p2362_p11), %s2360_s27, 128, %s2366_s22, %s124_s28  }
  0x48   : > { %p2638_p5 = scmp.ne.s32.totalorder %s2633_s17, 0 }
  0x49   : > { %s2396_s20 = sand.u32 (!%p2638_p5), 1, %s2212_s10   ;;  %p2639_p0 = scmp.ne.s32.totalorder (!%p2638_p5), %s2631_s15, 0 }
  0x4a   : > { %143 = sbr.rel (%p2638_p5) target bundleno = 2554 (0x9fa), region = 28  ;;  %s1794_s26 = sshll.u32 (!%p2638_p5), %s2396_s20, 3 }
  0x4b   : > { %s146_s19 = scalar_lea.sflag (!%p2638_p5), [#allocation3], %s2396_s20  ;;  %s149_s29 = scalar_lea.vmem (!%p2638_p5), [#allocation2], %s1794_s26 }
  0x51   : > { %2195 = dma.done.wait (%p2639_p0), %s146_s19, 128  }
  0x52   : > { %2197 = vsyncadd (%p2639_p0), %s146_s19, 4294967168  ;;  %p2640_p11 = scmp.eq.s32.totalorder %s2281_s13, 0 }
  0x54   : > { %2199 = dma.done.wait (%p2640_p11), [#allocation6], 1024   ;;  %p2641_p1 = pmov %p2640_p11 }
  0x55   : > { %v2226_v0 = vmov 0.0|0.0   ;;  %vm2227_vm0 = vmmov 0   ;;  %v2228_v1 = vmov 0.0   ;;  %v175_v2 = vld [vmem:[#allocation5] sm:$0xff]  ;;  %v176_v3 = vld [vmem:[#allocation5 + $0x8] sm:$0xff]  ;;  %v177_v4 = vld [vmem:[#allocation5 + $0x10] sm:$0xff] }
  0x56   : > { %2201 = vsyncadd (%p2641_p1), [#allocation6], 4294966272  ;;  %1971 = vmatprep.subr.bf16.mxu0 %v2226_v0  ;;  %1877 = vmatprep.mubr.msk.f32.mxu0 %vm2227_vm0, %v2228_v1  ;;  %v1972_v5 = vpack.c.bf16 %v176_v3, %v175_v2  ;;  %v178_v6 = vld [vmem:[#allocation5 + $0x18] sm:$0xff]  ;;  %vm179_vm1 = vcmask 261120   ;;  %s2229_s15 = smov 120   ;;  %s2230_s17 = smov 96  }
  0x57   : > { %1880 = vmatprep.subr.mxu1 %v2228_v1  ;;  %1882 = vmatprep.mubr.msk.f32.mxu1 %vm2227_vm0, %v2228_v1  ;;  %v1975_v7 = vpack.c.bf16 %v178_v6, %v177_v4  ;;  %v174_v8 = vld [vmem:[%s149_s29] sm:$0xff]  ;;  %s2231_s27 = smov 80   ;;  %s2232_s22 = smov 88   ;;  %vm256_vm2 = vcmask 64512   ;;  %vm926_vm3 = vcmask 130048   ;;  %vm928_vm4 = vcmask 195584  }
  0x58   : > { %1973 = vmatpush3.bf16.msra.mxu0 %v1972_v5  ;;  %s2233_s23 = smov 72   ;;  %s2234_s28 = smov 112  }
  0x59   : > { %1974 = vmatprep.subr.bf16.mxu0 %v2226_v0  ;;  %s2235_s30 = smov 104   ;;  %s2236_s3 = smov 56  }
  0x5a   : > { %s2237_s4 = smov 64   ;;  %s2238_s5 = smov 48  }
  0x5b   : > { %s2239_s6 = smov 40   ;;  %s2240_s7 = smov 8  }
  0x5c   : > { %1976 = vmatpush3.bf16.msra.mxu0 %v1975_v7  ;;  %s2241_s18 = smov 16   ;;  %s2242_s24 = smov 32  }
  0x5d   : > { %1890 = vmatprep.subr.mxu0 %v2228_v1  ;;  %s2243_s25 = smov 24   ;;  %s1824_s19 = sshll.u32 %s2281_s13, 7 }
  0x5e   : > { %s173_s29 = scalar_lea.vmem [#allocation7], %s1794_s26  ;;  %s2244_s13 = smov [#allocation7]  }
  0x5f   : > { %1878 = vmatmul.mubr.msk.f32.vlgmr.msra.gmra.mrb[0].mxu0 %vm179_vm1, %v174_v8  ;;  %v936_v8 = vld [vmem:[#allocation5 + $0x20] sm:$0xff]  ;;  %s2154_s26 = sshll.u32 %s2244_s13, 4  ;;  %s2155_s26 = int_to_ptr.vmem [resolvable:$false] %s2154_s26 }
  0x60   : > { %1892 = vmatprep.mubr.msk.f32.mxu0 %vm2227_vm0, %v2228_v1 }
 0x132   : > { %v2421_v9 = vpop.f32.mrb[0].mxu0 }
 0x133   : > { %418 = vrot.lane.b32.xlu1 %v2421_v9, %s2229_s15  ;;  %254 = vrot.lane.b32.xlu0 %v2421_v9, %s2230_s17  ;;  %v1879_v10 = vpop.f32.mrb[1].mxu0 }
 0x134   : > { %v937_v10 = vld [vmem:[#allocation5 + $0x28] sm:$0xff] }
 0x137   : > { %585 = vrot.lane.b32.xlu1 %v2421_v9, %s2231_s27  ;;  %420 = vrot.lane.b32.xlu0 %v2421_v9, %s2232_s22 }
 0x13b   : > { %750 = vrot.lane.b32.xlu1 %v2421_v9, %s2233_s23  ;;  %583 = vrot.lane.b32.xlu0 %v2421_v9, %s2234_s28 }
 0x13f   : > { %748 = vrot.lane.b32.xlu0 %v2421_v9, %s2235_s30 }
 0x1a5   : > { %v419_v11 = vpop.permute.xlu1 %418  ;;  %v255_v12 = vpop.permute.xlu0 %254 }
 0x1a6   : > { %1881 = vmatpush3.xpose.msk.msra.mxu1 %vm256_vm2, %v255_v12  ;;  %v938_v12 = vld [vmem:[#allocation5 + $0x30] sm:$0xff] }
 0x1a7   : > { %1885 = vmatprep.subr.mxu1 %v2228_v1 }
 0x1a9   : > { %1883 = vmatmul.mubr.msk.f32.vlgmr.msra.gmra.mrb[0].mxu1 %vm256_vm2, %v2421_v9  ;;  %v421_v13 = vpop.permute.xlu0 %420  ;;  %v586_v14 = vpop.permute.xlu1 %585 }
 0x1aa   : > { %1891 = vmatpush3.xpose.msk.msra.mxu0 %vm256_vm2, %v421_v13  ;;  %1887 = vmatprep.mubr.msk.f32.mxu1 %vm2227_vm0, %v2228_v1  ;;  %v939_v13 = vld [vmem:[#allocation5 + $0x38] sm:$0xff] }
 0x1ab   : > { %1900 = vmatprep.subr.mxu0 %v2228_v1 }
 0x1ad   : > { %1893 = vmatmul.mubr.msk.f32.vlgmr.msra.gmra.mrb[2].mxu0 %vm256_vm2, %v419_v11  ;;  %v584_v15 = vpop.permute.xlu0 %583  ;;  %v751_v16 = vpop.permute.xlu1 %750  ;;  %v1978_v11 = vpack.c.bf16 %v937_v10, %v936_v8 }
 0x1ae   : > { %1901 = vmatpush3.xpose.msk.msra.mxu0 %vm256_vm2, %v586_v14  ;;  %1902 = vmatprep.mubr.msk.f32.mxu0 %vm2227_vm0, %v2228_v1  ;;  %v1981_v14 = vpack.c.bf16 %v939_v13, %v938_v12 }
 0x1af   : > { %1910 = vmatprep.subr.mxu0 %v2228_v1 }
 0x1b1   : > { %1903 = vmatmul.mubr.msk.f32.vlgmr.msra.gmra.mrb[4].mxu0 %vm256_vm2, %v584_v15  ;;  %v749_v17 = vpop.permute.xlu0 %748 }
 0x1b2   : > { %1911 = vmatpush3.xpose.msk.msra.mxu0 %vm256_vm2, %v751_v16  ;;  %1912 = vmatprep.mubr.msk.f32.mxu0 %vm2227_vm0, %v2228_v1 }
 0x1b3   : > { %1977 = vmatprep.subr.bf16.mxu0 %v2226_v0 }
 0x1b5   : > { %1913 = vmatmul.mubr.msk.f32.vlgmr.msra.gmra.mrb[6].mxu0 %vm256_vm2, %v749_v17 }
 0x1b6   : > { %1928 = vmatprep.mubr.msk.f32.mxu0 %vm2227_vm0, %v2228_v1  ;;  %1979 = vmatpush3.bf16.msra.mxu0 %v1978_v11 }
 0x1b7   : > { %1980 = vmatprep.subr.bf16.mxu0 %v2226_v0 }
 0x1ba   : > { %1982 = vmatpush3.bf16.msra.mxu0 %v1981_v14 }
 0x1bb   : > { %1941 = vmatprep.subr.mxu0 %v2228_v1 }
 0x27c   : > { %v327_v18 = vpop.f32.mrb[0].mxu1 }
 0x27d   : > { %v1884_v19 = vpop.f32.mrb[1].mxu1  ;;  %v331_v20 = vsel %vm256_vm2, %v327_v18, -inf }
 0x27e   : > { %332 = vmax.xlane.f32.xlu1 %v331_v20 }
 0x280   : > { %v492_v21 = vpop.f32.mrb[2].mxu0 }
 0x281   : > { %v1894_v22 = vpop.f32.mrb[3].mxu0  ;;  %v496_v23 = vsel %vm256_vm2, %v492_v21, -inf }
 0x282   : > { %497 = vmax.xlane.f32.xlu0 %v496_v23 }
 0x284   : > { %v657_v24 = vpop.f32.mrb[4].mxu0 }
 0x285   : > { %v1904_v25 = vpop.f32.mrb[5].mxu0  ;;  %v661_v26 = vsel %vm256_vm2, %v657_v24, -inf }
 0x286   : > { %662 = vmax.xlane.f32.xlu0 %v661_v26 }
 0x288   : > { %v822_v27 = vpop.f32.mrb[6].mxu0 }
 0x289   : > { %v1914_v28 = vpop.f32.mrb[7].mxu0  ;;  %v826_v29 = vsel %vm256_vm2, %v822_v27, -inf }
 0x28a   : > { %827 = vmax.xlane.f32.xlu1 %v826_v29 }
 0x29b   : > { %507 = vrot.lane.b32.xlu1 %v2421_v9, %s2236_s3 }
 0x30b   : > { %v333_v30 = vpop.xlane.xlu1 %332 }
 0x30c   : > { %v334_v31 = vsub.f32 %v327_v18, %v333_v30 }
 0x30e   : > { %v335_v32 = vmul.f32 1.442695, %v334_v31 }
 0x30f   : > { %v498_v33 = vpop.xlane.xlu0 %497 }
 0x310   : > { %2060 = vpow2.f32 %v335_v32  ;;  %v499_v34 = vsub.f32 %v492_v21, %v498_v33 }
 0x312   : > { %v500_v35 = vmul.f32 1.442695, %v499_v34 }
 0x313   : > { %v663_v45 = vpop.xlane.xlu0 %662 }
 0x314   : > { %2062 = vpow2.f32 %v500_v35  ;;  %v664_v46 = vsub.f32 %v657_v24, %v663_v45 }
 0x316   : > { %v665_v47 = vmul.f32 1.442695, %v664_v46 }
 0x317   : > { %v828_v36 = vpop.xlane.xlu1 %827 }
 0x318   : > { %v829_v37 = vsub.f32 %v822_v27, %v828_v36 }
 0x31a   : > { %v2061_v38 = vpop.eup %2060  ;;  %v830_v39 = vmul.f32 1.442695, %v829_v37 }
 0x31b   : > { %v337_v40 = vsel %vm256_vm2, %v2061_v38, 0.0  ;;  %v508_v50 = vpop.permute.xlu1 %507 }
 0x31c   : > { %2064 = vpow2.f32 %v830_v39  ;;  %338 = vadd.xlane.f32.xlu0 %v337_v40 }
 0x31d   : > { %2066 = vpow2.f32 %v665_v47 }
 0x31e   : > { %v2063_v41 = vpop.eup %2062 }
 0x31f   : > { %v502_v42 = vsel %vm256_vm2, %v2063_v41, 0.0 }
 0x320   : > { %503 = vadd.xlane.f32.xlu1 %v502_v42 }
 0x326   : > { %v2065_v43 = vpop.eup %2064 }
 0x327   : > { %v832_v44 = vsel %vm256_vm2, %v2065_v43, 0.0  ;;  %v2067_v48 = vpop.eup %2066 }
 0x328   : > { %833 = vadd.xlane.f32.xlu1 %v832_v44  ;;  %v667_v49 = vsel %vm256_vm2, %v2067_v48, 0.0 }
 0x332   : > { %342 = vrot.lane.b32.xlu0 %v2421_v9, %s2237_s4 }
 0x339   : > { %672 = vrot.lane.b32.xlu1 %v2421_v9, %s2238_s5 }
 0x351   : > { %668 = vadd.xlane.f32.xlu0 %v667_v49 }
 0x367   : > { %837 = vrot.lane.b32.xlu0 %v2421_v9, %s2239_s6 }
 0x3a9   : > { %v339_v51 = vpop.xlane.xlu0 %338 }
 0x3aa   : > { %2068 = vrcp.f32 %v339_v51 }
 0x3ad   : > { %v343_v52 = vpop.permute.xlu0 %342  ;;  %v504_v53 = vpop.xlane.xlu1 %503 }
 0x3ae   : > { %2070 = vrcp.f32 %v504_v53  ;;  %1886 = vmatpush3.msra.mxu1 %v343_v52 }
 0x3af   : > { %1895 = vmatprep.subr.mxu1 %v2228_v1 }
 0x3b4   : > { %v2069_v54 = vpop.eup %2068 }
 0x3b5   : > { %v341_v55 = vmul.f32 %v2069_v54, %v2061_v38  ;;  %v834_v56 = vpop.xlane.xlu1 %833 }
 0x3b7   : > { %1888 = vmatmul.mubr.msk.f32.vlgmr.msra.gmra.mrb[2].mxu1 %vm256_vm2, %v341_v55 }
 0x3b8   : > { %v2071_v57 = vpop.eup %2070  ;;  %1896 = vmatpush3.msra.mxu1 %v508_v50  ;;  %1897 = vmatprep.mubr.msk.f32.mxu1 %vm2227_vm0, %v2228_v1 }
 0x3b9   : > { %v506_v58 = vmul.f32 %v2071_v57, %v2063_v41  ;;  %v673_v59 = vpop.permute.xlu1 %672  ;;  %1905 = vmatprep.subr.mxu1 %v2228_v1 }
 0x3bb   : > { %1898 = vmatmul.mubr.msk.f32.vlgmr.msra.gmra.mrb[4].mxu1 %vm256_vm2, %v506_v58 }
 0x3bc   : > { %1906 = vmatpush3.msra.mxu1 %v673_v59  ;;  %1907 = vmatprep.mubr.msk.f32.mxu1 %vm2227_vm0, %v2228_v1 }
 0x3bd   : > { %1915 = vmatprep.subr.mxu1 %v2228_v1 }
 0x3de   : > { %v669_v60 = vpop.xlane.xlu0 %668 }
 0x3df   : > { %2072 = vrcp.f32 %v669_v60 }
 0x3e0   : > { %2074 = vrcp.f32 %v834_v56 }
 0x3e2   : > { %v838_v2 = vpop.permute.xlu0 %837 }
 0x3e9   : > { %v2073_v61 = vpop.eup %2072 }
 0x3ea   : > { %v671_v62 = vmul.f32 %v2073_v61, %v2067_v48  ;;  %v2075_v63 = vpop.eup %2074 }
 0x3eb   : > { %v836_v3 = vmul.f32 %v2075_v63, %v2065_v43 }
 0x3ec   : > { %1908 = vmatmul.mubr.msk.f32.vlgmr.msra.gmra.mrb[6].mxu1 %vm256_vm2, %v671_v62 }
 0x3ed   : > { %1916 = vmatpush3.msra.mxu1 %v838_v2  ;;  %1917 = vmatprep.mubr.msk.f32.mxu1 %vm2227_vm0, %v2228_v1 }
 0x3ee   : > { %1931 = vmatprep.subr.mxu1 %v2228_v1 }
 0x3f0   : > { %1918 = vmatmul.mubr.msk.f32.vlgmr.msra.gmra.mrb[8].mxu1 %vm256_vm2, %v836_v3 }
 0x3f1   : > { %1933 = vmatprep.mubr.msk.f32.mxu1 %vm2227_vm0, %v2228_v1 }
 0x48a   : > { %v414_v4 = vpop.f32.mrb[2].mxu1 }
 0x48b   : > { %v1889_v5 = vpop.f32.mrb[3].mxu1 }
 0x48e   : > { %v579_v6 = vpop.f32.mrb[4].mxu1 }
 0x48f   : > { %914 = vrot.lane.b32.xlu1 %v579_v6, %s2240_s7  ;;  %v1899_v7 = vpop.f32.mrb[5].mxu1 }
 0x4bf   : > { %v744_v15 = vpop.f32.mrb[6].mxu1 }
 0x4c0   : > { %918 = vrot.lane.b32.xlu0 %v744_v15, %s2241_s18  ;;  %v1909_v16 = vpop.f32.mrb[7].mxu1 }
 0x4c3   : > { %v909_v17 = vpop.f32.mrb[8].mxu1 }
 0x4c4   : > { %930 = vrot.lane.b32.xlu0 %v2421_v9, %s2242_s24  ;;  %922 = vrot.lane.b32.xlu1 %v909_v17, %s2243_s25  ;;  %v1919_v0 = vpop.f32.mrb[9].mxu1 }
 0x501   : > { %v915_v18 = vpop.permute.xlu1 %914 }
 0x502   : > { %v925_v20 = vsel %vm256_vm2, %v414_v4, %v915_v18 }
 0x532   : > { %v919_v19 = vpop.permute.xlu0 %918 }
 0x533   : > { %v927_v21 = vsel %vm926_vm3, %v925_v20, %v919_v19 }
 0x536   : > { %v931_v22 = vpop.permute.xlu0 %930  ;;  %v923_v23 = vpop.permute.xlu1 %922 }
 0x537   : > { %v929_v24 = vsel %vm928_vm4, %v927_v21, %v923_v23 }
 0x538   : > { %v933_v25 = vadd.f32 %v931_v22, %v929_v24 }
 0x53a   : > { %v934_v26 = vmax.f32 %v933_v25, 0.0 }
 0x53c   : > { %1929 = vmatmul.mubr.msk.f32.vlgmr.msra.gmra.mrb[8].mxu0 %vm179_vm1, %v934_v26 }
 0x53d   : > { %1943 = vmatprep.mubr.msk.f32.mxu0 %vm2227_vm0, %v2228_v1 }
 0x60f   : > { %v2503_v9 = vpop.f32.mrb[8].mxu0 }
 0x610   : > { %1179 = vrot.lane.b32.xlu0 %v2503_v9, %s2232_s22  ;;  %1014 = vrot.lane.b32.xlu1 %v2503_v9, %s2230_s17  ;;  %v1930_v27 = vpop.f32.mrb[9].mxu0  ;;  %s2580_s22 = scalar_lea.hbm %s2627_s2, %s1824_s19 }
 0x614   : > { %1344 = vrot.lane.b32.xlu0 %v2503_v9, %s2231_s27  ;;  %1177 = vrot.lane.b32.xlu1 %v2503_v9, %s2229_s15  ;;  %s1707_s15 = sshll.u32 %s173_s29, 4  ;;  %s2582_s15 = int_to_ptr.vmem [resolvable:$true] %s1707_s15 }
 0x615   : > { %p2157_p10 = scmp.lt.s32.totalorder %s2582_s15, %s2155_s26 }
 0x618   : > { %1509 = vrot.lane.b32.xlu0 %v2503_v9, %s2233_s23  ;;  %1342 = vrot.lane.b32.xlu1 %v2503_v9, %s2234_s28  ;;  %s1694_s23 = scalar_lea.sflag [#allocation4], %s2396_s20  ;;  %s2150_s28 = scalar_lea.vmem %s2582_s15, 128 }
 0x619   : > { %p2151_p4 = scmp.ne.s32.totalorder %s2582_s15, %s2150_s28 }
 0x61b   : > { %p2152_p6 = pnand %p2151_p4, %p2351_p12 }
 0x61c   : > { %1507 = vrot.lane.b32.xlu1 %v2503_v9, %s2235_s30  ;;  %s2156_s30 = scalar_lea.vmem %s2155_s26, 256 }
 0x61d   : > { %p2153_p8 = pneg %p2152_p6  ;;  %p2158_p13 = scmp.lt.s32.totalorder %s2156_s30, %s2150_s28 }
 0x61f   : > { %p2159_p3 = por %p2158_p13, %p2157_p10 }
 0x621   : > { %p2160_p7 = pnand %p2159_p3, %p2153_p8 }
 0x682   : > { %v1180_v28 = vpop.permute.xlu0 %1179  ;;  %v1015_v29 = vpop.permute.xlu1 %1014 }
 0x683   : > { %1932 = vmatpush3.xpose.msk.msra.mxu1 %vm256_vm2, %v1015_v29  ;;  %1942 = vmatpush3.xpose.msk.msra.mxu0 %vm256_vm2, %v1180_v28 }
 0x684   : > { %1951 = vmatprep.subr.mxu0 %v2228_v1  ;;  %1936 = vmatprep.subr.mxu1 %v2228_v1 }
 0x686   : > { %v1345_v30 = vpop.permute.xlu0 %1344  ;;  %1934 = vmatmul.mubr.msk.f32.vlgmr.msra.gmra.mrb[10].mxu1 %vm256_vm2, %v2503_v9  ;;  %v1178_v31 = vpop.permute.xlu1 %1177 }
 0x687   : > { %1944 = vmatmul.mubr.msk.f32.vlgmr.msra.gmra.mrb[10].mxu0 %vm256_vm2, %v1178_v31  ;;  %1938 = vmatprep.mubr.msk.f32.mxu1 %vm2227_vm0, %v2228_v1 }
 0x688   : > { %1952 = vmatpush3.xpose.msk.msra.mxu0 %vm256_vm2, %v1345_v30  ;;  %1953 = vmatprep.mubr.msk.f32.mxu0 %vm2227_vm0, %v2228_v1 }
 0x689   : > { %1961 = vmatprep.subr.mxu0 %v2228_v1 }
 0x68a   : > { %v1510_v32 = vpop.permute.xlu0 %1509  ;;  %v1343_v33 = vpop.permute.xlu1 %1342 }
 0x68b   : > { %1954 = vmatmul.mubr.msk.f32.vlgmr.msra.gmra.mrb[12].mxu0 %vm256_vm2, %v1343_v33 }
 0x68c   : > { %1962 = vmatpush3.xpose.msk.msra.mxu0 %vm256_vm2, %v1510_v32  ;;  %1963 = vmatprep.mubr.msk.f32.mxu0 %vm2227_vm0, %v2228_v1 }
 0x68e   : > { %v1508_v34 = vpop.permute.xlu1 %1507 }
 0x68f   : > { %1964 = vmatmul.mubr.msk.f32.vlgmr.msra.gmra.mrb[14].mxu0 %vm256_vm2, %v1508_v34 }
 0x759   : > { %v1086_v35 = vpop.f32.mrb[10].mxu1 }
 0x75a   : > { %v1935_v36 = vpop.f32.mrb[11].mxu1  ;;  %v1251_v37 = vpop.f32.mrb[10].mxu0  ;;  %v1090_v38 = vsel %vm256_vm2, %v1086_v35, -inf }
 0x75b   : > { %1091 = vmax.xlane.f32.xlu0 %v1090_v38  ;;  %v1945_v39 = vpop.f32.mrb[11].mxu0  ;;  %v1255_v40 = vsel %vm256_vm2, %v1251_v37, -inf }
 0x75c   : > { %1256 = vmax.xlane.f32.xlu1 %v1255_v40 }
 0x75e   : > { %v1416_v41 = vpop.f32.mrb[12].mxu0 }
 0x75f   : > { %v1955_v42 = vpop.f32.mrb[13].mxu0  ;;  %v1420_v43 = vsel %vm256_vm2, %v1416_v41, -inf }
 0x760   : > { %1421 = vmax.xlane.f32.xlu0 %v1420_v43 }
 0x762   : > { %v1581_v44 = vpop.f32.mrb[14].mxu0 }
 0x763   : > { %v1965_v45 = vpop.f32.mrb[15].mxu0  ;;  %v1585_v46 = vsel %vm256_vm2, %v1581_v44, -inf }
 0x764   : > { %1586 = vmax.xlane.f32.xlu0 %v1585_v46 }
 0x76d   : > { %1101 = vrot.lane.b32.xlu1 %v2503_v9, %s2237_s4 }
 0x7e8   : > { %v1092_v47 = vpop.xlane.xlu0 %1091 }
 0x7e9   : > { %v1093_v48 = vsub.f32 %v1086_v35, %v1092_v47  ;;  %v1257_v49 = vpop.xlane.xlu1 %1256 }
 0x7ea   : > { %v1258_v50 = vsub.f32 %v1251_v37, %v1257_v49 }
 0x7eb   : > { %v1094_v51 = vmul.f32 1.442695, %v1093_v48 }
 0x7ec   : > { %v1259_v52 = vmul.f32 1.442695, %v1258_v50 }
 0x7ed   : > { %2076 = vpow2.f32 %v1094_v51  ;;  %v1102_v53 = vpop.permute.xlu1 %1101  ;;  %v1422_v54 = vpop.xlane.xlu0 %1421 }
 0x7ee   : > { %2078 = vpow2.f32 %v1259_v52  ;;  %v1423_v55 = vsub.f32 %v1416_v41, %v1422_v54  ;;  %1937 = vmatpush3.msra.mxu1 %v1102_v53 }
 0x7ef   : > { %1946 = vmatprep.subr.mxu1 %v2228_v1 }
 0x7f0   : > { %v1424_v56 = vmul.f32 1.442695, %v1423_v55 }
 0x7f1   : > { %v1587_v57 = vpop.xlane.xlu0 %1586 }
 0x7f2   : > { %2080 = vpow2.f32 %v1424_v56  ;;  %v1588_v58 = vsub.f32 %v1581_v44, %v1587_v57 }
 0x7f4   : > { %v1589_v59 = vmul.f32 1.442695, %v1588_v58 }
 0x7f6   : > { %2082 = vpow2.f32 %v1589_v59 }
 0x7f7   : > { %v2077_v60 = vpop.eup %2076 }
 0x7f8   : > { %v2079_v61 = vpop.eup %2078  ;;  %v1096_v62 = vsel %vm256_vm2, %v2077_v60, 0.0 }
 0x7f9   : > { %1097 = vadd.xlane.f32.xlu1 %v1096_v62  ;;  %v1261_v63 = vsel %vm256_vm2, %v2079_v61, 0.0 }
 0x7fa   : > { %1262 = vadd.xlane.f32.xlu0 %v1261_v63 }
 0x7fc   : > { %v2081_v2 = vpop.eup %2080 }
 0x7fd   : > { %v1426_v3 = vsel %vm256_vm2, %v2081_v2, 0.0 }
 0x7fe   : > { %1427 = vadd.xlane.f32.xlu1 %v1426_v3 }
 0x800   : > { %v2083_v4 = vpop.eup %2082 }
 0x801   : > { %v1591_v5 = vsel %vm256_vm2, %v2083_v4, 0.0 }
 0x802   : > { %1592 = vadd.xlane.f32.xlu0 %v1591_v5 }
 0x80f   : > { %1431 = vrot.lane.b32.xlu1 %v2503_v9, %s2238_s5 }
 0x813   : > { %1596 = vrot.lane.b32.xlu1 %v2503_v9, %s2239_s6 }
 0x818   : > { %1266 = vrot.lane.b32.xlu0 %v2503_v9, %s2236_s3 }
 0x886   : > { %v1098_v6 = vpop.xlane.xlu1 %1097 }
 0x887   : > { %2084 = vrcp.f32 %v1098_v6  ;;  %v1263_v7 = vpop.xlane.xlu0 %1262 }
 0x888   : > { %2086 = vrcp.f32 %v1263_v7 }
 0x88b   : > { %v1428_v8 = vpop.xlane.xlu1 %1427 }
 0x88c   : > { %2088 = vrcp.f32 %v1428_v8 }
 0x88f   : > { %v1593_v10 = vpop.xlane.xlu0 %1592  ;;  %v1432_v16 = vpop.permute.xlu1 %1431 }
 0x890   : > { %2090 = vrcp.f32 %v1593_v10 }
 0x891   : > { %v2085_v11 = vpop.eup %2084 }
 0x892   : > { %v1100_v12 = vmul.f32 %v2085_v11, %v2077_v60  ;;  %v2087_v13 = vpop.eup %2086 }
 0x893   : > { %v1267_v14 = vpop.permute.xlu0 %1266  ;;  %v1265_v15 = vmul.f32 %v2087_v13, %v2079_v61  ;;  %v1597_v19 = vpop.permute.xlu1 %1596 }
 0x894   : > { %1939 = vmatmul.mubr.msk.f32.vlgmr.msra.gmra.mrb[12].mxu1 %vm256_vm2, %v1100_v12 }
 0x895   : > { %1947 = vmatpush3.msra.mxu1 %v1267_v14  ;;  %1948 = vmatprep.mubr.msk.f32.mxu1 %vm2227_vm0, %v2228_v1 }
 0x896   : > { %1956 = vmatprep.subr.mxu1 %v2228_v1  ;;  %v2089_v17 = vpop.eup %2088 }
 0x897   : > { %v1430_v0 = vmul.f32 %v2089_v17, %v2081_v2 }
 0x898   : > { %1949 = vmatmul.mubr.msk.f32.vlgmr.msra.gmra.mrb[14].mxu1 %vm256_vm2, %v1265_v15 }
 0x899   : > { %1957 = vmatpush3.msra.mxu1 %v1432_v16  ;;  %1958 = vmatprep.mubr.msk.f32.mxu1 %vm2227_vm0, %v2228_v1 }
 0x89a   : > { %1966 = vmatprep.subr.mxu1 %v2228_v1  ;;  %v2091_v18 = vpop.eup %2090 }
 0x89b   : > { %v1595_v20 = vmul.f32 %v2091_v18, %v2083_v4 }
 0x89c   : > { %1959 = vmatmul.mubr.msk.f32.vlgmr.msra.gmra.mrb[16].mxu1 %vm256_vm2, %v1430_v0 }
 0x89d   : > { %1967 = vmatpush3.msra.mxu1 %v1597_v19  ;;  %1968 = vmatprep.mubr.msk.f32.mxu1 %vm2227_vm0, %v2228_v1 }
 0x8a0   : > { %1969 = vmatmul.mubr.msk.f32.vlgmr.msra.gmra.mrb[18].mxu1 %vm256_vm2, %v1595_v20 }
 0x967   : > { %v1173_v21 = vpop.f32.mrb[12].mxu1 }
 0x968   : > { %v1940_v22 = vpop.f32.mrb[13].mxu1 }
 0x96b   : > { %v1338_v23 = vpop.f32.mrb[14].mxu1 }
 0x96c   : > { %1673 = vrot.lane.b32.xlu0 %v1338_v23, %s2240_s7  ;;  %v1950_v24 = vpop.f32.mrb[15].mxu1 }
 0x96f   : > { %v1503_v25 = vpop.f32.mrb[16].mxu1 }
 0x970   : > { %1677 = vrot.lane.b32.xlu1 %v1503_v25, %s2241_s18  ;;  %v1960_v26 = vpop.f32.mrb[17].mxu1 }
 0x973   : > { %v1668_v27 = vpop.f32.mrb[18].mxu1 }
 0x974   : > { %1687 = vrot.lane.b32.xlu1 %v2503_v9, %s2242_s24  ;;  %1681 = vrot.lane.b32.xlu0 %v1668_v27, %s2243_s25  ;;  %v1970_v1 = vpop.f32.mrb[19].mxu1 }
 0x9de   : > { %v1674_v28 = vpop.permute.xlu0 %1673 }
 0x9df   : > { %v1684_v30 = vsel %vm256_vm2, %v1173_v21, %v1674_v28 }
 0x9e2   : > { %v1678_v29 = vpop.permute.xlu1 %1677 }
 0x9e3   : > { %v1685_v31 = vsel %vm926_vm3, %v1684_v30, %v1678_v29 }
 0x9e6   : > { %v1688_v32 = vpop.permute.xlu1 %1687  ;;  %v1682_v33 = vpop.permute.xlu0 %1681 }
 0x9e7   : > { %v1686_v34 = vsel %vm928_vm4, %v1685_v31, %v1682_v33 }
 0x9e8   : > { %v1690_v9 = vadd.f32 %v1688_v32, %v1686_v34 }
 0x9ea   : > { %v1691_v35 = vmax.f32 %v1690_v9, 0.0 }
 0x9ec   : > { %1692 = vst.msk [vmem:[%s173_s29] sm:$0xff] %vm179_vm1, %v1691_v35 }
 0x9ed   : > { %2163 = shalt.err (!%p2160_p7)
}
 0x9ee   : > { %s2164_s20 = scalar_lea.hbm %s2580_s22, 128  ;;  %s2168_s5 = scalar_lea.hbm %s2627_s2, 256 }
 0x9ef   : > { %p2165_p9 = scmp.ne.s32.totalorder %s2580_s22, %s2164_s20  ;;  %p2169_p0 = scmp.lt.u32.totalorder %s2580_s22, %s2627_s2 }
 0x9f0   : > { %p2170_p11 = scmp.lt.u32.totalorder %s2168_s5, %s2164_s20  ;;  %p2172_p4 = scmp.lt.u32.totalorder %s2164_s20, %s2580_s22 }
 0x9f1   : > { %p2166_p2 = pnand %p2165_p9, %p2351_p12 }
 0x9f2   : > { %p2171_p1 = por %p2170_p11, %p2169_p0 }
 0x9f3   : > { %p2167_p5 = pneg %p2166_p2 }
 0x9f4   : > { %p2173_p6 = por %p2172_p4, %p2171_p1 }
 0x9f6   : > { %p2174_p8 = pnand %p2173_p6, %p2167_p5 }
 0x9f8   : > { %2177 = shalt.err (!%p2174_p8)
}
 0x9f9   : > { %1989 = dma.vmem_to_hbm [thread:$0]  (%p2351_p12), %s2582_s15, 128, %s2580_s22, %s1694_s23  }
 0x9fa PF: > { %s1719_s18 = sand.u32 1, %s2208_s9   ;;  %p2642_p10 = scmp.ne.s32.totalorder %s2632_s16, 0 }
 0x9fb   : > { %p2643_p13 = scmp.ge.s32.totalorder %s2220_s12, 2  ;;  %s1720_s24 = scalar_lea.sflag [#allocation4], %s1719_s18 }
 0x9fd   : > { %p2000_p3 = pnand %p2643_p13, %p2642_p10 }
 0x9ff   : > { %2203 = dma.done.wait (!%p2000_p3), %s1720_s24, 128  }
 0xa00   : > { %2205 = vsyncadd (!%p2000_p3), %s1720_s24, 4294967168  ;;  %p16_p7 = scmp.ge.s32.totalorder %s2316_s21, 4   ;;  %s2644_s9 = smov %s2212_s10 }
 0xa01   : > { %s2645_s10 = smov %s2216_s11  ;;  %s2646_s11 = smov %s2347_s8 }
 0xa02   : > { %s2647_s12 = smov %s2316_s21  ;;  %18 = sbr.rel (!%p16_p7) target bundleno = 6 (0x6), region = 78 }
 0xa09   :  { %1725 = vsyncpa [#allocation3], 1 }
 0xa0a   :  { %1727 = vsyncpa [#allocation3 + $0x1], 1 }
 0xa0b   :  { %1728 = vsyncpa [#allocation6], 1 }
 0xa0c   :  { %1729 = vsyncpa [#allocation4], 1 }
 0xa0d   :  { %1731 = vsyncpa [#allocation4 + $0x1], 1 }

</bundles_post_ra>
